<compile_context>
chip_gen: v7x
topology: tpu7x:2x2x1
jax: 0.10.0
libtpu: 0.0.40
codegen_flags: <defaults>
</compile_context>

<pallas_src>
import functools

import numpy as np

import jax
import jax.numpy as jnp
from jax.experimental import pallas as pl
from jax.experimental.pallas import tpu as pltpu


# ---------------------------------------------------------------------------
# Host-side weight prep: fold the horizontal taps (dx) + width zero-padding of
# each conv into a banded contraction matrix, so the kernel only handles the
# vertical (dy) shifts via row-padded VMEM scratch.
# ---------------------------------------------------------------------------
def _band_conv3(w_hwio, W):
    """(3,3,Cin,Cout) HWIO conv (stride 1, pad 1) -> (3, W*Cin, W*Cout)."""
    kH, kW, Cin, Cout = w_hwio.shape
    w = np.asarray(w_hwio, np.float32)
    band = np.zeros((kH, W * Cin, W * Cout), np.float32)
    for dy in range(kH):
        for xo in range(W):
            for dx in range(kW):
                xi = xo + dx - 1                      # padding = 1
                if 0 <= xi < W:
                    band[dy, xi * Cin:(xi + 1) * Cin,
                         xo * Cout:(xo + 1) * Cout] = w[dy, dx]
    return band


def _band_conv_down(w_hwio, W):
    """(4,4,C,Cout) HWIO conv (stride 2, pad 1) -> (4, W*C, (W//2)*Cout)."""
    kH, kW, Cin, Cout = w_hwio.shape
    Wo = W // 2
    w = np.asarray(w_hwio, np.float32)
    band = np.zeros((kH, W * Cin, Wo * Cout), np.float32)
    for dy in range(kH):
        for xo in range(Wo):
            for dx in range(kW):
                xi = 2 * xo + dx - 1                  # stride 2, padding 1
                if 0 <= xi < W:
                    band[dy, xi * Cin:(xi + 1) * Cin,
                         xo * Cout:(xo + 1) * Cout] = w[dy, dx]
    return band


def prepare_params(params, H, W):
    del H  # the banded layout only depends on the width
    b1 = np.asarray(params["b1"], np.float32)
    b2 = np.asarray(params["b2"], np.float32)
    return {
        # MXU operands in bf16 (accumulation stays f32 inside the kernel).
        "w1b": jnp.asarray(_band_conv3(params["w1"], W), jnp.bfloat16),
        "w2b": jnp.asarray(_band_conv3(params["w2"], W), jnp.bfloat16),
        "wdb": jnp.asarray(_band_conv_down(params["wd"], W), jnp.bfloat16),
        # biases pre-tiled to the flattened (W*Cout) lane layout.
        "b1t": jnp.asarray(np.tile(b1, W)[None, :], jnp.float32),
        "b2t": jnp.asarray(np.tile(b2, W)[None, :], jnp.float32),
    }


# ---------------------------------------------------------------------------
# Fused kernel: one batch element per grid step.
# ---------------------------------------------------------------------------
def _fused_block_kernel(x_ref, w1_ref, b1_ref, w2_ref, b2_ref, wd_ref,
                        osame_ref, ods_ref,
                        xpad_s, hpad_s, acc_s, accd_s, *, slope):
    # x_ref    : (H,  W*Cin)           f32   one NHWC batch element, flattened
    # w1_ref   : (3,  W*Cin,  W*Cout)  bf16  banded conv1 weights
    # b1_ref   : (1,  W*Cout)          f32
    # w2_ref   : (3,  W*Cout, W*Cout)  bf16  banded conv2 weights
    # b2_ref   : (1,  W*Cout)          f32
    # wd_ref   : (4,  W*Cout, Wo*Cout) bf16  banded stride-2 downsample weights
    # osame_ref: (H,  W*Cout)          f32   lane-dense out_same block
    # ods_ref  : (Ho, Wo*Cout)         f32   out_ds block
    # xpad_s   : (H+2, W*Cin)   f32  row-padded input scratch
    # hpad_s   : (H+2, W*Cout)  f32  row-padded activation scratch (reused)
    # acc_s    : (H,   W*Cout)  f32  conv accumulator (VMEM)
    # accd_s   : (Ho, Wo*Cout)  f32  downsample accumulator (VMEM)
    H = x_ref.shape[0]
    Ho = ods_ref.shape[0]
    bf16 = jnp.bfloat16

    def act(v):
        if slope == 0.0:                        # compile-time specialization
            return jnp.maximum(v, 0.0)          # ReLU
        return jnp.where(v > 0, v, slope * v)   # LeakyReLU

    # ---- conv1: row-pad the input inside VMEM (no HBM pad pass) ----
    zx = jnp.zeros((1, xpad_s.shape[1]), xpad_s.dtype)
    xpad_s[0:1, :] = zx
    xpad_s[H + 1:H + 2, :] = zx
    xpad_s[1:H + 1, :] = x_ref[...]

    acc_s[...] = jnp.broadcast_to(b1_ref[...], acc_s.shape)   # bias as init
    for dy in range(3):                                        # 3 vertical taps
        acc_s[...] += jnp.dot(xpad_s[dy:dy + H, :].astype(bf16), w1_ref[dy],
                              preferred_element_type=jnp.float32)
    h1 = act(acc_s[...])

    # ---- conv2: same scheme on the row-padded conv1 output ----
    zh = jnp.zeros((1, hpad_s.shape[1]), hpad_s.dtype)
    hpad_s[0:1, :] = zh
    hpad_s[H + 1:H + 2, :] = zh
    hpad_s[1:H + 1, :] = h1

    acc_s[...] = jnp.broadcast_to(b2_ref[...], acc_s.shape)
    for dy in range(3):
        acc_s[...] += jnp.dot(hpad_s[dy:dy + H, :].astype(bf16), w2_ref[dy],
                              preferred_element_type=jnp.float32)
    h2 = act(acc_s[...])

    osame_ref[...] = h2.astype(osame_ref.dtype)       # lane-dense store

    # ---- downsample: 4x4, stride 2, pad 1, no bias ----
    hpad_s[1:H + 1, :] = h2          # reuse padded scratch (border rows stay 0)
    accd_s[...] = jnp.zeros_like(accd_s)
    for dy in range(4):
        # in-kernel stride-2 row access (no HBM parity-split copy)
        rows = hpad_s[pl.ds(dy, Ho, stride=2), :].astype(bf16)
        accd_s[...] += jnp.dot(rows, wd_ref[dy],
                               preferred_element_type=jnp.float32)
    ods_ref[...] = accd_s[...].astype(ods_ref.dtype)


# ---------------------------------------------------------------------------
# Wrapper (PyTorch NCHW in / NCHW out).
# ---------------------------------------------------------------------------
def unet_conv_block(x_nchw, prep, slope=0.0, need_ds=True):
    # TODO(synk): batch_norm=True path (nn.BatchNorm2d) not implemented; this
    # mirrors UNetConvBlock(..., batch_norm=False).
    # TODO(synk): for large H, add a second grid axis over row blocks (2-row
    # halo via manual DMA) instead of one full-image block per batch element.
    B, Cin, H, W = x_nchw.shape
    WCi = W * Cin
    WCo = prep["w1b"].shape[2]
    Cout = WCo // W
    Ho, Wo = H // 2, W // 2
    WoCo = prep["wdb"].shape[2]

    x_flat = jnp.transpose(x_nchw, (0, 2, 3, 1)).reshape(B, H, WCi)  # NCHW->NHWC

    kernel = functools.partial(_fused_block_kernel, slope=slope)
    out_same_flat, out_ds_flat = pl.pallas_call(
        kernel,
        out_shape=(
            jax.ShapeDtypeStruct((B, H, WCo), x_nchw.dtype),
            jax.ShapeDtypeStruct((B, Ho, WoCo), x_nchw.dtype),
        ),
        grid=(B,),
        in_specs=[
            pl.BlockSpec((None, H, WCi), lambda b: (b, 0, 0)),
            pl.BlockSpec(prep["w1b"].shape, lambda b: (0, 0, 0)),
            pl.BlockSpec((1, WCo), lambda b: (0, 0)),
            pl.BlockSpec(prep["w2b"].shape, lambda b: (0, 0, 0)),
            pl.BlockSpec((1, WCo), lambda b: (0, 0)),
            pl.BlockSpec(prep["wdb"].shape, lambda b: (0, 0, 0)),
        ],
        out_specs=(
            pl.BlockSpec((None, H, WCo), lambda b: (b, 0, 0)),
            pl.BlockSpec((None, Ho, WoCo), lambda b: (b, 0, 0)),
        ),
        scratch_shapes=[
            pltpu.VMEM((H + 2, WCi), jnp.float32),
            pltpu.VMEM((H + 2, WCo), jnp.float32),
            pltpu.VMEM((H, WCo), jnp.float32),
            pltpu.VMEM((Ho, WoCo), jnp.float32),
        ],
        compiler_params=pltpu.CompilerParams(
            dimension_semantics=("parallel",),   # megacore split on v7x
            vmem_limit_bytes=32 * 1024 * 1024,
        ),
    )(x_flat, prep["w1b"], prep["b1t"], prep["w2b"], prep["b2t"], prep["wdb"])

    out_same = jnp.transpose(out_same_flat.reshape(B, H, W, Cout), (0, 3, 1, 2))
    if not need_ds:
        return out_same
    out_ds = jnp.transpose(out_ds_flat.reshape(B, Ho, Wo, Cout), (0, 3, 1, 2))
    return out_ds, out_same


# ---------------------------------------------------------------------------
# Pure-JAX (f32, XLA conv) reference for correctness checking.
# ---------------------------------------------------------------------------
def ref_forward(x_nchw, params, slope=0.0):
    dn = ("NHWC", "HWIO", "NHWC")
    act = lambda v: jnp.where(v > 0, v, slope * v)
    x = jnp.transpose(x_nchw, (0, 2, 3, 1))
    h = act(jax.lax.conv_general_dilated(
        x, params["w1"], (1, 1), [(1, 1), (1, 1)], dimension_numbers=dn)
        + params["b1"])
    h = act(jax.lax.conv_general_dilated(
        h, params["w2"], (1, 1), [(1, 1), (1, 1)], dimension_numbers=dn)
        + params["b2"])
    d = jax.lax.conv_general_dilated(
        h, params["wd"], (2, 2), [(1, 1), (1, 1)], dimension_numbers=dn)
    return jnp.transpose(d, (0, 3, 1, 2)), jnp.transpose(h, (0, 3, 1, 2))


if __name__ == "__main__":
    in_size, out_size = 4, 8
    B, H, W = 2, 16, 16

    key = jax.random.PRNGKey(0)
    k1, k2, k3, k4, k5, kx = jax.random.split(key, 6)
    # Weights in HWIO (PyTorch OIHW weight w_t maps via w = w_t.transpose(2,3,1,0)).
    params = {
        "w1": 0.1 * jax.random.normal(k1, (3, 3, in_size, out_size), jnp.float32),
        "b1": 0.1 * jax.random.normal(k2, (out_size,), jnp.float32),
        "w2": 0.1 * jax.random.normal(k3, (3, 3, out_size, out_size), jnp.float32),
        "b2": 0.1 * jax.random.normal(k4, (out_size,), jnp.float32),
        "wd": 0.1 * jax.random.normal(k5, (4, 4, out_size, out_size), jnp.float32),
    }
    x = jax.random.normal(kx, (B, in_size, H, W), jnp.float32)  # NCHW like PyTorch

    prep = prepare_params(params, H, W)          # one-time host-side weight prep
    out_ds, out_same = jax.jit(unet_conv_block)(x, prep)
    jax.block_until_ready((out_ds, out_same))

    ref_ds, ref_same = ref_forward(x, params)
    assert out_same.shape == (B, out_size, H, W)
    assert out_ds.shape == (B, out_size, H // 2, W // 2)
    # bf16 MXU operands with f32 accumulation vs. f32 XLA reference.
    assert jnp.allclose(out_same, ref_same, rtol=2e-2, atol=2e-2)
    assert jnp.allclose(out_ds, ref_ds, rtol=2e-2, atol=2e-2)

    print("KERNEL_OK")
</pallas_src>

<mosaic_0001>
module attributes {stable_mosaic.version = 11 : i64} {
  func.func @_fused_block_kernel(%arg0: i32, %arg1: memref<1x16x64xf32, #tpu.memory_space<vmem>>, %arg2: memref<3x64x128xbf16, #tpu.memory_space<vmem>>, %arg3: memref<1x128xf32, #tpu.memory_space<vmem>>, %arg4: memref<3x128x128xbf16, #tpu.memory_space<vmem>>, %arg5: memref<1x128xf32, #tpu.memory_space<vmem>>, %arg6: memref<4x128x64xbf16, #tpu.memory_space<vmem>>, %arg7: memref<1x16x128xf32, #tpu.memory_space<vmem>>, %arg8: memref<1x8x64xf32, #tpu.memory_space<vmem>>, %arg9: memref<18x64xf32, #tpu.memory_space<vmem>>, %arg10: memref<18x128xf32, #tpu.memory_space<vmem>>, %arg11: memref<16x128xf32, #tpu.memory_space<vmem>>, %arg12: memref<8x64xf32, #tpu.memory_space<vmem>>) attributes {dimension_semantics = [#tpu.dimension_semantics<parallel>], iteration_bounds = array<i64: 2>, scalar_prefetch = 0 : i64, scratch_operands = 4 : i64, tpu.core_type = #tpu.core_type<tc>, window_params = [{transform_indices = @transform_0, window_bounds = array<i64: 1, 16, 64>}, {pipeline_mode = #tpu.pipeline_mode<synchronous>, transform_indices = @transform_1, window_bounds = array<i64: 3, 64, 128>}, {pipeline_mode = #tpu.pipeline_mode<synchronous>, transform_indices = @transform_2, window_bounds = array<i64: 1, 128>}, {pipeline_mode = #tpu.pipeline_mode<synchronous>, transform_indices = @transform_3, window_bounds = array<i64: 3, 128, 128>}, {pipeline_mode = #tpu.pipeline_mode<synchronous>, transform_indices = @transform_4, window_bounds = array<i64: 1, 128>}, {pipeline_mode = #tpu.pipeline_mode<synchronous>, transform_indices = @transform_5, window_bounds = array<i64: 4, 128, 64>}, {transform_indices = @transform_6, window_bounds = array<i64: 1, 16, 128>}, {transform_indices = @transform_7, window_bounds = array<i64: 1, 8, 64>}]} {
    %cst = arith.constant 0.000000e+00 : f32
    %0 = vector.broadcast %cst : f32 to vector<1x64xf32>
    %c0 = arith.constant 0 : index
    %c0_0 = arith.constant 0 : index
    %1 = vector.load %arg9[%c0, %c0_0] : memref<18x64xf32, #tpu.memory_space<vmem>>, vector<1x64xf32>
    tpu.vector_store %arg9[%c0, %c0_0], %0 {strides = array<i32>} : memref<18x64xf32, #tpu.memory_space<vmem>>, vector<1x64xf32>,
    %c17 = arith.constant 17 : index
    %c0_1 = arith.constant 0 : index
    %2 = vector.load %arg9[%c17, %c0_1] : memref<18x64xf32, #tpu.memory_space<vmem>>, vector<1x64xf32>
    tpu.vector_store %arg9[%c17, %c0_1], %0 {strides = array<i32>} : memref<18x64xf32, #tpu.memory_space<vmem>>, vector<1x64xf32>,
    %c0_2 = arith.constant 0 : index
    %c0_3 = arith.constant 0 : index
    %c0_4 = arith.constant 0 : index
    %3 = vector.load %arg1[%c0_2, %c0_3, %c0_4] : memref<1x16x64xf32, #tpu.memory_space<vmem>>, vector<1x16x64xf32>
    %4 = vector.shape_cast %3 : vector<1x16x64xf32> to vector<16x64xf32>
    %c1 = arith.constant 1 : index
    %c0_5 = arith.constant 0 : index
    %5 = vector.load %arg9[%c1, %c0_5] : memref<18x64xf32, #tpu.memory_space<vmem>>, vector<16x64xf32>
    tpu.vector_store %arg9[%c1, %c0_5], %4 {strides = array<i32>} : memref<18x64xf32, #tpu.memory_space<vmem>>, vector<16x64xf32>,
    %c0_6 = arith.constant 0 : index
    %c0_7 = arith.constant 0 : index
    %6 = vector.load %arg3[%c0_6, %c0_7] : memref<1x128xf32, #tpu.memory_space<vmem>>, vector<1x128xf32>
    %7 = vector.shape_cast %6 : vector<1x128xf32> to vector<1x128xf32>
    %8 = vector.broadcast %7 : vector<1x128xf32> to vector<16x128xf32>
    %c0_8 = arith.constant 0 : index
    %c0_9 = arith.constant 0 : index
    %9 = vector.load %arg11[%c0_8, %c0_9] : memref<16x128xf32, #tpu.memory_space<vmem>>, vector<16x128xf32>
    tpu.vector_store %arg11[%c0_8, %c0_9], %8 {strides = array<i32>} : memref<16x128xf32, #tpu.memory_space<vmem>>, vector<16x128xf32>,
    %c0_10 = arith.constant 0 : index
    %c0_11 = arith.constant 0 : index
    %10 = vector.load %arg11[%c0_10, %c0_11] : memref<16x128xf32, #tpu.memory_space<vmem>>, vector<16x128xf32>
    %c0_12 = arith.constant 0 : index
    %c0_13 = arith.constant 0 : index
    %11 = vector.load %arg9[%c0_12, %c0_13] : memref<18x64xf32, #tpu.memory_space<vmem>>, vector<16x64xf32>
    %12 = arith.truncf %11 : vector<16x64xf32> to vector<16x64xbf16>
    %c0_14 = arith.constant 0 : index
    %c0_15 = arith.constant 0 : index
    %c0_16 = arith.constant 0 : index
    %13 = vector.load %arg2[%c0_14, %c0_15, %c0_16] : memref<3x64x128xbf16, #tpu.memory_space<vmem>>, vector<1x64x128xbf16>
    %14 = vector.shape_cast %13 : vector<1x64x128xbf16> to vector<64x128xbf16>
    %cst_17 = arith.constant dense<0.000000e+00> : vector<16x128xf32>
    %15 = tpu.matmul %12, %14, %cst_17 {dimension_numbers = #tpu.dot_dimension_numbers<[1], [0], [0], [1], [0, 0, 1, 1], [], []>} : vector<16x64xbf16>, vector<64x128xbf16>, vector<16x128xf32> -> vector<16x128xf32>
    %16 = arith.addf %10, %15 : vector<16x128xf32>
    %c0_18 = arith.constant 0 : index
    %c0_19 = arith.constant 0 : index
    %17 = vector.load %arg11[%c0_18, %c0_19] : memref<16x128xf32, #tpu.memory_space<vmem>>, vector<16x128xf32>
    tpu.vector_store %arg11[%c0_18, %c0_19], %16 {strides = array<i32>} : memref<16x128xf32, #tpu.memory_space<vmem>>, vector<16x128xf32>,
    %c0_20 = arith.constant 0 : index
    %c0_21 = arith.constant 0 : index
    %18 = vector.load %arg11[%c0_20, %c0_21] : memref<16x128xf32, #tpu.memory_space<vmem>>, vector<16x128xf32>
    %c1_22 = arith.constant 1 : index
    %c0_23 = arith.constant 0 : index
    %19 = vector.load %arg9[%c1_22, %c0_23] : memref<18x64xf32, #tpu.memory_space<vmem>>, vector<16x64xf32>
    %20 = arith.truncf %19 : vector<16x64xf32> to vector<16x64xbf16>
    %c1_24 = arith.constant 1 : index
    %c0_25 = arith.constant 0 : index
    %c0_26 = arith.constant 0 : index
    %21 = vector.load %arg2[%c1_24, %c0_25, %c0_26] : memref<3x64x128xbf16, #tpu.memory_space<vmem>>, vector<1x64x128xbf16>
    %22 = vector.shape_cast %21 : vector<1x64x128xbf16> to vector<64x128xbf16>
    %cst_27 = arith.constant dense<0.000000e+00> : vector<16x128xf32>
    %23 = tpu.matmul %20, %22, %cst_27 {dimension_numbers = #tpu.dot_dimension_numbers<[1], [0], [0], [1], [0, 0, 1, 1], [], []>} : vector<16x64xbf16>, vector<64x128xbf16>, vector<16x128xf32> -> vector<16x128xf32>
    %24 = arith.addf %18, %23 : vector<16x128xf32>
    %c0_28 = arith.constant 0 : index
    %c0_29 = arith.constant 0 : index
    %25 = vector.load %arg11[%c0_28, %c0_29] : memref<16x128xf32, #tpu.memory_space<vmem>>, vector<16x128xf32>
    tpu.vector_store %arg11[%c0_28, %c0_29], %24 {strides = array<i32>} : memref<16x128xf32, #tpu.memory_space<vmem>>, vector<16x128xf32>,
    %c0_30 = arith.constant 0 : index
    %c0_31 = arith.constant 0 : index
    %26 = vector.load %arg11[%c0_30, %c0_31] : memref<16x128xf32, #tpu.memory_space<vmem>>, vector<16x128xf32>
    %c2 = arith.constant 2 : index
    %c0_32 = arith.constant 0 : index
    %27 = vector.load %arg9[%c2, %c0_32] : memref<18x64xf32, #tpu.memory_space<vmem>>, vector<16x64xf32>
    %28 = arith.truncf %27 : vector<16x64xf32> to vector<16x64xbf16>
    %c2_33 = arith.constant 2 : index
    %c0_34 = arith.constant 0 : index
    %c0_35 = arith.constant 0 : index
    %29 = vector.load %arg2[%c2_33, %c0_34, %c0_35] : memref<3x64x128xbf16, #tpu.memory_space<vmem>>, vector<1x64x128xbf16>
    %30 = vector.shape_cast %29 : vector<1x64x128xbf16> to vector<64x128xbf16>
    %cst_36 = arith.constant dense<0.000000e+00> : vector<16x128xf32>
    %31 = tpu.matmul %28, %30, %cst_36 {dimension_numbers = #tpu.dot_dimension_numbers<[1], [0], [0], [1], [0, 0, 1, 1], [], []>} : vector<16x64xbf16>, vector<64x128xbf16>, vector<16x128xf32> -> vector<16x128xf32>
    %32 = arith.addf %26, %31 : vector<16x128xf32>
    %c0_37 = arith.constant 0 : index
    %c0_38 = arith.constant 0 : index
    %33 = vector.load %arg11[%c0_37, %c0_38] : memref<16x128xf32, #tpu.memory_space<vmem>>, vector<16x128xf32>
    tpu.vector_store %arg11[%c0_37, %c0_38], %32 {strides = array<i32>} : memref<16x128xf32, #tpu.memory_space<vmem>>, vector<16x128xf32>,
    %c0_39 = arith.constant 0 : index
    %c0_40 = arith.constant 0 : index
    %34 = vector.load %arg11[%c0_39, %c0_40] : memref<16x128xf32, #tpu.memory_space<vmem>>, vector<16x128xf32>
    %cst_41 = arith.constant 0.000000e+00 : f32
    %35 = vector.broadcast %cst_41 : f32 to vector<16x128xf32>
    %36 = arith.maximumf %34, %35 : vector<16x128xf32>
    %cst_42 = arith.constant 0.000000e+00 : f32
    %37 = vector.broadcast %cst_42 : f32 to vector<1x128xf32>
    %c0_43 = arith.constant 0 : index
    %c0_44 = arith.constant 0 : index
    %38 = vector.load %arg10[%c0_43, %c0_44] : memref<18x128xf32, #tpu.memory_space<vmem>>, vector<1x128xf32>
    tpu.vector_store %arg10[%c0_43, %c0_44], %37 {strides = array<i32>} : memref<18x128xf32, #tpu.memory_space<vmem>>, vector<1x128xf32>,
    %c17_45 = arith.constant 17 : index
    %c0_46 = arith.constant 0 : index
    %39 = vector.load %arg10[%c17_45, %c0_46] : memref<18x128xf32, #tpu.memory_space<vmem>>, vector<1x128xf32>
    tpu.vector_store %arg10[%c17_45, %c0_46], %37 {strides = array<i32>} : memref<18x128xf32, #tpu.memory_space<vmem>>, vector<1x128xf32>,
    %c1_47 = arith.constant 1 : index
    %c0_48 = arith.constant 0 : index
    %40 = vector.load %arg10[%c1_47, %c0_48] : memref<18x128xf32, #tpu.memory_space<vmem>>, vector<16x128xf32>
    tpu.vector_store %arg10[%c1_47, %c0_48], %36 {strides = array<i32>} : memref<18x128xf32, #tpu.memory_space<vmem>>, vector<16x128xf32>,
    %c0_49 = arith.constant 0 : index
    %c0_50 = arith.constant 0 : index
    %41 = vector.load %arg5[%c0_49, %c0_50] : memref<1x128xf32, #tpu.memory_space<vmem>>, vector<1x128xf32>
    %42 = vector.shape_cast %41 : vector<1x128xf32> to vector<1x128xf32>
    %43 = vector.broadcast %42 : vector<1x128xf32> to vector<16x128xf32>
    %c0_51 = arith.constant 0 : index
    %c0_52 = arith.constant 0 : index
    %44 = vector.load %arg11[%c0_51, %c0_52] : memref<16x128xf32, #tpu.memory_space<vmem>>, vector<16x128xf32>
    tpu.vector_store %arg11[%c0_51, %c0_52], %43 {strides = array<i32>} : memref<16x128xf32, #tpu.memory_space<vmem>>, vector<16x128xf32>,
    %c0_53 = arith.constant 0 : index
    %c0_54 = arith.constant 0 : index
    %45 = vector.load %arg11[%c0_53, %c0_54] : memref<16x128xf32, #tpu.memory_space<vmem>>, vector<16x128xf32>
    %c0_55 = arith.constant 0 : index
    %c0_56 = arith.constant 0 : index
    %46 = vector.load %arg10[%c0_55, %c0_56] : memref<18x128xf32, #tpu.memory_space<vmem>>, vector<16x128xf32>
    %47 = arith.truncf %46 : vector<16x128xf32> to vector<16x128xbf16>
    %c0_57 = arith.constant 0 : index
    %c0_58 = arith.constant 0 : index
    %c0_59 = arith.constant 0 : index
    %48 = vector.load %arg4[%c0_57, %c0_58, %c0_59] : memref<3x128x128xbf16, #tpu.memory_space<vmem>>, vector<1x128x128xbf16>
    %49 = vector.shape_cast %48 : vector<1x128x128xbf16> to vector<128x128xbf16>
    %cst_60 = arith.constant dense<0.000000e+00> : vector<16x128xf32>
    %50 = tpu.matmul %47, %49, %cst_60 {dimension_numbers = #tpu.dot_dimension_numbers<[1], [0], [0], [1], [0, 0, 1, 1], [], []>} : vector<16x128xbf16>, vector<128x128xbf16>, vector<16x128xf32> -> vector<16x128xf32>
    %51 = arith.addf %45, %50 : vector<16x128xf32>
    %c0_61 = arith.constant 0 : index
    %c0_62 = arith.constant 0 : index
    %52 = vector.load %arg11[%c0_61, %c0_62] : memref<16x128xf32, #tpu.memory_space<vmem>>, vector<16x128xf32>
    tpu.vector_store %arg11[%c0_61, %c0_62], %51 {strides = array<i32>} : memref<16x128xf32, #tpu.memory_space<vmem>>, vector<16x128xf32>,
    %c0_63 = arith.constant 0 : index
    %c0_64 = arith.constant 0 : index
    %53 = vector.load %arg11[%c0_63, %c0_64] : memref<16x128xf32, #tpu.memory_space<vmem>>, vector<16x128xf32>
    %c1_65 = arith.constant 1 : index
    %c0_66 = arith.constant 0 : index
    %54 = vector.load %arg10[%c1_65, %c0_66] : memref<18x128xf32, #tpu.memory_space<vmem>>, vector<16x128xf32>
    %55 = arith.truncf %54 : vector<16x128xf32> to vector<16x128xbf16>
    %c1_67 = arith.constant 1 : index
    %c0_68 = arith.constant 0 : index
    %c0_69 = arith.constant 0 : index
    %56 = vector.load %arg4[%c1_67, %c0_68, %c0_69] : memref<3x128x128xbf16, #tpu.memory_space<vmem>>, vector<1x128x128xbf16>
    %57 = vector.shape_cast %56 : vector<1x128x128xbf16> to vector<128x128xbf16>
    %cst_70 = arith.constant dense<0.000000e+00> : vector<16x128xf32>
    %58 = tpu.matmul %55, %57, %cst_70 {dimension_numbers = #tpu.dot_dimension_numbers<[1], [0], [0], [1], [0, 0, 1, 1], [], []>} : vector<16x128xbf16>, vector<128x128xbf16>, vector<16x128xf32> -> vector<16x128xf32>
    %59 = arith.addf %53, %58 : vector<16x128xf32>
    %c0_71 = arith.constant 0 : index
    %c0_72 = arith.constant 0 : index
    %60 = vector.load %arg11[%c0_71, %c0_72] : memref<16x128xf32, #tpu.memory_space<vmem>>, vector<16x128xf32>
    tpu.vector_store %arg11[%c0_71, %c0_72], %59 {strides = array<i32>} : memref<16x128xf32, #tpu.memory_space<vmem>>, vector<16x128xf32>,
    %c0_73 = arith.constant 0 : index
    %c0_74 = arith.constant 0 : index
    %61 = vector.load %arg11[%c0_73, %c0_74] : memref<16x128xf32, #tpu.memory_space<vmem>>, vector<16x128xf32>
    %c2_75 = arith.constant 2 : index
    %c0_76 = arith.constant 0 : index
    %62 = vector.load %arg10[%c2_75, %c0_76] : memref<18x128xf32, #tpu.memory_space<vmem>>, vector<16x128xf32>
    %63 = arith.truncf %62 : vector<16x128xf32> to vector<16x128xbf16>
    %c2_77 = arith.constant 2 : index
    %c0_78 = arith.constant 0 : index
    %c0_79 = arith.constant 0 : index
    %64 = vector.load %arg4[%c2_77, %c0_78, %c0_79] : memref<3x128x128xbf16, #tpu.memory_space<vmem>>, vector<1x128x128xbf16>
    %65 = vector.shape_cast %64 : vector<1x128x128xbf16> to vector<128x128xbf16>
    %cst_80 = arith.constant dense<0.000000e+00> : vector<16x128xf32>
    %66 = tpu.matmul %63, %65, %cst_80 {dimension_numbers = #tpu.dot_dimension_numbers<[1], [0], [0], [1], [0, 0, 1, 1], [], []>} : vector<16x128xbf16>, vector<128x128xbf16>, vector<16x128xf32> -> vector<16x128xf32>
    %67 = arith.addf %61, %66 : vector<16x128xf32>
    %c0_81 = arith.constant 0 : index
    %c0_82 = arith.constant 0 : index
    %68 = vector.load %arg11[%c0_81, %c0_82] : memref<16x128xf32, #tpu.memory_space<vmem>>, vector<16x128xf32>
    tpu.vector_store %arg11[%c0_81, %c0_82], %67 {strides = array<i32>} : memref<16x128xf32, #tpu.memory_space<vmem>>, vector<16x128xf32>,
    %c0_83 = arith.constant 0 : index
    %c0_84 = arith.constant 0 : index
    %69 = vector.load %arg11[%c0_83, %c0_84] : memref<16x128xf32, #tpu.memory_space<vmem>>, vector<16x128xf32>
    %cst_85 = arith.constant 0.000000e+00 : f32
    %70 = vector.broadcast %cst_85 : f32 to vector<16x128xf32>
    %71 = arith.maximumf %69, %70 : vector<16x128xf32>
    %c0_86 = arith.constant 0 : index
    %c0_87 = arith.constant 0 : index
    %c0_88 = arith.constant 0 : index
    %72 = vector.load %arg7[%c0_86, %c0_87, %c0_88] : memref<1x16x128xf32, #tpu.memory_space<vmem>>, vector<1x16x128xf32>
    %73 = vector.shape_cast %72 : vector<1x16x128xf32> to vector<16x128xf32>
    %74 = vector.shape_cast %71 : vector<16x128xf32> to vector<1x16x128xf32>
    tpu.vector_store %arg7[%c0_86, %c0_87, %c0_88], %74 {strides = array<i32>} : memref<1x16x128xf32, #tpu.memory_space<vmem>>, vector<1x16x128xf32>,
    %c1_89 = arith.constant 1 : index
    %c0_90 = arith.constant 0 : index
    %75 = vector.load %arg10[%c1_89, %c0_90] : memref<18x128xf32, #tpu.memory_space<vmem>>, vector<16x128xf32>
    tpu.vector_store %arg10[%c1_89, %c0_90], %71 {strides = array<i32>} : memref<18x128xf32, #tpu.memory_space<vmem>>, vector<16x128xf32>,
    %cst_91 = arith.constant 0.000000e+00 : f32
    %76 = vector.broadcast %cst_91 : f32 to vector<8x64xf32>
    %c0_92 = arith.constant 0 : index
    %c0_93 = arith.constant 0 : index
    %77 = vector.load %arg12[%c0_92, %c0_93] : memref<8x64xf32, #tpu.memory_space<vmem>>, vector<8x64xf32>
    tpu.vector_store %arg12[%c0_92, %c0_93], %76 {strides = array<i32>} : memref<8x64xf32, #tpu.memory_space<vmem>>, vector<8x64xf32>,
    %c0_94 = arith.constant 0 : index
    %c0_95 = arith.constant 0 : index
    %78 = tpu.strided_load %arg10[%c0_94, %c0_95] {strides = array<i32: 2, 1>} : memref<18x128xf32, #tpu.memory_space<vmem>>, vector<8x128xf32>
    %79 = arith.truncf %78 : vector<8x128xf32> to vector<8x128xbf16>
    %c0_96 = arith.constant 0 : index
    %c0_97 = arith.constant 0 : index
    %80 = vector.load %arg12[%c0_96, %c0_97] : memref<8x64xf32, #tpu.memory_space<vmem>>, vector<8x64xf32>
    %c0_98 = arith.constant 0 : index
    %c0_99 = arith.constant 0 : index
    %c0_100 = arith.constant 0 : index
    %81 = vector.load %arg6[%c0_98, %c0_99, %c0_100] : memref<4x128x64xbf16, #tpu.memory_space<vmem>>, vector<1x128x64xbf16>
    %82 = vector.shape_cast %81 : vector<1x128x64xbf16> to vector<128x64xbf16>
    %cst_101 = arith.constant dense<0.000000e+00> : vector<8x64xf32>
    %83 = tpu.matmul %79, %82, %cst_101 {dimension_numbers = #tpu.dot_dimension_numbers<[1], [0], [0], [1], [0, 0, 1, 1], [], []>} : vector<8x128xbf16>, vector<128x64xbf16>, vector<8x64xf32> -> vector<8x64xf32>
    %84 = arith.addf %80, %83 : vector<8x64xf32>
    %c0_102 = arith.constant 0 : index
    %c0_103 = arith.constant 0 : index
    %85 = vector.load %arg12[%c0_102, %c0_103] : memref<8x64xf32, #tpu.memory_space<vmem>>, vector<8x64xf32>
    tpu.vector_store %arg12[%c0_102, %c0_103], %84 {strides = array<i32>} : memref<8x64xf32, #tpu.memory_space<vmem>>, vector<8x64xf32>,
    %c1_104 = arith.constant 1 : index
    %c0_105 = arith.constant 0 : index
    %86 = tpu.strided_load %arg10[%c1_104, %c0_105] {strides = array<i32: 2, 1>} : memref<18x128xf32, #tpu.memory_space<vmem>>, vector<8x128xf32>
    %87 = arith.truncf %86 : vector<8x128xf32> to vector<8x128xbf16>
    %c0_106 = arith.constant 0 : index
    %c0_107 = arith.constant 0 : index
    %88 = vector.load %arg12[%c0_106, %c0_107] : memref<8x64xf32, #tpu.memory_space<vmem>>, vector<8x64xf32>
    %c1_108 = arith.constant 1 : index
    %c0_109 = arith.constant 0 : index
    %c0_110 = arith.constant 0 : index
    %89 = vector.load %arg6[%c1_108, %c0_109, %c0_110] : memref<4x128x64xbf16, #tpu.memory_space<vmem>>, vector<1x128x64xbf16>
    %90 = vector.shape_cast %89 : vector<1x128x64xbf16> to vector<128x64xbf16>
    %cst_111 = arith.constant dense<0.000000e+00> : vector<8x64xf32>
    %91 = tpu.matmul %87, %90, %cst_111 {dimension_numbers = #tpu.dot_dimension_numbers<[1], [0], [0], [1], [0, 0, 1, 1], [], []>} : vector<8x128xbf16>, vector<128x64xbf16>, vector<8x64xf32> -> vector<8x64xf32>
    %92 = arith.addf %88, %91 : vector<8x64xf32>
    %c0_112 = arith.constant 0 : index
    %c0_113 = arith.constant 0 : index
    %93 = vector.load %arg12[%c0_112, %c0_113] : memref<8x64xf32, #tpu.memory_space<vmem>>, vector<8x64xf32>
    tpu.vector_store %arg12[%c0_112, %c0_113], %92 {strides = array<i32>} : memref<8x64xf32, #tpu.memory_space<vmem>>, vector<8x64xf32>,
    %c2_114 = arith.constant 2 : index
    %c0_115 = arith.constant 0 : index
    %94 = tpu.strided_load %arg10[%c2_114, %c0_115] {strides = array<i32: 2, 1>} : memref<18x128xf32, #tpu.memory_space<vmem>>, vector<8x128xf32>
    %95 = arith.truncf %94 : vector<8x128xf32> to vector<8x128xbf16>
    %c0_116 = arith.constant 0 : index
    %c0_117 = arith.constant 0 : index
    %96 = vector.load %arg12[%c0_116, %c0_117] : memref<8x64xf32, #tpu.memory_space<vmem>>, vector<8x64xf32>
    %c2_118 = arith.constant 2 : index
    %c0_119 = arith.constant 0 : index
    %c0_120 = arith.constant 0 : index
    %97 = vector.load %arg6[%c2_118, %c0_119, %c0_120] : memref<4x128x64xbf16, #tpu.memory_space<vmem>>, vector<1x128x64xbf16>
    %98 = vector.shape_cast %97 : vector<1x128x64xbf16> to vector<128x64xbf16>
    %cst_121 = arith.constant dense<0.000000e+00> : vector<8x64xf32>
    %99 = tpu.matmul %95, %98, %cst_121 {dimension_numbers = #tpu.dot_dimension_numbers<[1], [0], [0], [1], [0, 0, 1, 1], [], []>} : vector<8x128xbf16>, vector<128x64xbf16>, vector<8x64xf32> -> vector<8x64xf32>
    %100 = arith.addf %96, %99 : vector<8x64xf32>
    %c0_122 = arith.constant 0 : index
    %c0_123 = arith.constant 0 : index
    %101 = vector.load %arg12[%c0_122, %c0_123] : memref<8x64xf32, #tpu.memory_space<vmem>>, vector<8x64xf32>
    tpu.vector_store %arg12[%c0_122, %c0_123], %100 {strides = array<i32>} : memref<8x64xf32, #tpu.memory_space<vmem>>, vector<8x64xf32>,
    %c3 = arith.constant 3 : index
    %c0_124 = arith.constant 0 : index
    %102 = tpu.strided_load %arg10[%c3, %c0_124] {strides = array<i32: 2, 1>} : memref<18x128xf32, #tpu.memory_space<vmem>>, vector<8x128xf32>
    %103 = arith.truncf %102 : vector<8x128xf32> to vector<8x128xbf16>
    %c0_125 = arith.constant 0 : index
    %c0_126 = arith.constant 0 : index
    %104 = vector.load %arg12[%c0_125, %c0_126] : memref<8x64xf32, #tpu.memory_space<vmem>>, vector<8x64xf32>
    %c3_127 = arith.constant 3 : index
    %c0_128 = arith.constant 0 : index
    %c0_129 = arith.constant 0 : index
    %105 = vector.load %arg6[%c3_127, %c0_128, %c0_129] : memref<4x128x64xbf16, #tpu.memory_space<vmem>>, vector<1x128x64xbf16>
    %106 = vector.shape_cast %105 : vector<1x128x64xbf16> to vector<128x64xbf16>
    %cst_130 = arith.constant dense<0.000000e+00> : vector<8x64xf32>
    %107 = tpu.matmul %103, %106, %cst_130 {dimension_numbers = #tpu.dot_dimension_numbers<[1], [0], [0], [1], [0, 0, 1, 1], [], []>} : vector<8x128xbf16>, vector<128x64xbf16>, vector<8x64xf32> -> vector<8x64xf32>
    %108 = arith.addf %104, %107 : vector<8x64xf32>
    %c0_131 = arith.constant 0 : index
    %c0_132 = arith.constant 0 : index
    %109 = vector.load %arg12[%c0_131, %c0_132] : memref<8x64xf32, #tpu.memory_space<vmem>>, vector<8x64xf32>
    tpu.vector_store %arg12[%c0_131, %c0_132], %108 {strides = array<i32>} : memref<8x64xf32, #tpu.memory_space<vmem>>, vector<8x64xf32>,
    %c0_133 = arith.constant 0 : index
    %c0_134 = arith.constant 0 : index
    %110 = vector.load %arg12[%c0_133, %c0_134] : memref<8x64xf32, #tpu.memory_space<vmem>>, vector<8x64xf32>
    %c0_135 = arith.constant 0 : index
    %c0_136 = arith.constant 0 : index
    %c0_137 = arith.constant 0 : index
    %111 = vector.load %arg8[%c0_135, %c0_136, %c0_137] : memref<1x8x64xf32, #tpu.memory_space<vmem>>, vector<1x8x64xf32>
    %112 = vector.shape_cast %111 : vector<1x8x64xf32> to vector<8x64xf32>
    %113 = vector.shape_cast %110 : vector<8x64xf32> to vector<1x8x64xf32>
    tpu.vector_store %arg8[%c0_135, %c0_136, %c0_137], %113 {strides = array<i32>} : memref<1x8x64xf32, #tpu.memory_space<vmem>>, vector<1x8x64xf32>,
    return
  }
  func.func @transform_0(%arg0: i32) -> (i32, i32, i32) {
    %c0_i32 = arith.constant 0 : i32
    %c0_i32_0 = arith.constant 0 : i32
    %c0_i32_1 = arith.constant 0 : i32
    return %arg0, %c0_i32, %c0_i32_0 : i32, i32, i32
  }
  func.func @transform_1(%arg0: i32) -> (i32, i32, i32) {
    %c0_i32 = arith.constant 0 : i32
    %c0_i32_0 = arith.constant 0 : i32
    %c0_i32_1 = arith.constant 0 : i32
    %c0_i32_2 = arith.constant 0 : i32
    return %c0_i32, %c0_i32_0, %c0_i32_1 : i32, i32, i32
  }
  func.func @transform_2(%arg0: i32) -> (i32, i32) {
    %c0_i32 = arith.constant 0 : i32
    %c0_i32_0 = arith.constant 0 : i32
    %c0_i32_1 = arith.constant 0 : i32
    return %c0_i32, %c0_i32_0 : i32, i32
  }
  func.func @transform_3(%arg0: i32) -> (i32, i32, i32) {
    %c0_i32 = arith.constant 0 : i32
    %c0_i32_0 = arith.constant 0 : i32
    %c0_i32_1 = arith.constant 0 : i32
    %c0_i32_2 = arith.constant 0 : i32
    return %c0_i32, %c0_i32_0, %c0_i32_1 : i32, i32, i32
  }
  func.func @transform_4(%arg0: i32) -> (i32, i32) {
    %c0_i32 = arith.constant 0 : i32
    %c0_i32_0 = arith.constant 0 : i32
    %c0_i32_1 = arith.constant 0 : i32
    return %c0_i32, %c0_i32_0 : i32, i32
  }
  func.func @transform_5(%arg0: i32) -> (i32, i32, i32) {
    %c0_i32 = arith.constant 0 : i32
    %c0_i32_0 = arith.constant 0 : i32
    %c0_i32_1 = arith.constant 0 : i32
    %c0_i32_2 = arith.constant 0 : i32
    return %c0_i32, %c0_i32_0, %c0_i32_1 : i32, i32, i32
  }
  func.func @transform_6(%arg0: i32) -> (i32, i32, i32) {
    %c0_i32 = arith.constant 0 : i32
    %c0_i32_0 = arith.constant 0 : i32
    %c0_i32_1 = arith.constant 0 : i32
    return %arg0, %c0_i32, %c0_i32_0 : i32, i32, i32
  }
  func.func @transform_7(%arg0: i32) -> (i32, i32, i32) {
    %c0_i32 = arith.constant 0 : i32
    %c0_i32_0 = arith.constant 0 : i32
    %c0_i32_1 = arith.constant 0 : i32
    return %arg0, %c0_i32, %c0_i32_0 : i32, i32, i32
  }
}

</mosaic_0001>

<bundles_post_ra>
// kernel: unet_conv_block.1
= control target key start
LH: loop header
LB: loop body
LE: loop exit
PB: predicated region body
PF: predicated region fallthrough
CT: control target
= control target key end

     0   :  { %s2050_s24 = smov 0   ;;  %s2392_s0 = inlined_call_operand.vmem [shape: f32[2,16,64], index: 0, kind: input, shape index: {}]   ;;  %s2393_s1 = inlined_call_operand.vmem [shape: bf16[3,64,128], index: 1, kind: input, shape index: {}]   ;;  %s2394_s2 = inlined_call_operand.vmem [shape: f32[1,128], index: 2, kind: input, shape index: {}]   ;;  %s2395_s3 = inlined_call_operand.vmem [shape: bf16[3,128,128], index: 3, kind: input, shape index: {}]   ;;  %s2396_s4 = inlined_call_operand.vmem [shape: f32[1,128], index: 4, kind: input, shape index: {}]   ;;  %s2397_s5 = inlined_call_operand.vmem [shape: bf16[4,128,64], index: 5, kind: input, shape index: {}]   ;;  %s2398_s6 = inlined_call_operand.vmem [shape: f32[2,16,128], index: 6, kind: output, shape index: {0}]   ;;  %s2399_s7 = inlined_call_operand.vmem [shape: f32[2,8,64], index: 7, kind: output, shape index: {1}]  }
   0x1 LB: > { %s1465_s25 = sadd.s32 4294967295, %s2006_s24   ;;  %p1469_p0 = scmp.ge.s32.totalorder %s2006_s24, 1  ;;  %s2006_s24 = sphi %s2050_s24, %s18_s24  }
   0x2   : > { %p240_p1 = scmp.lt.s32.totalorder %s2006_s24, 3 }
   0x4   : > { %p241_p2 = pnand %p1469_p0, %p240_p1 }
   0x5   : > { %v1932_v0 = vld [vmem:[%s2393_s1] sm:$0xff] (!%p241_p2)   ;;  %v2008_v1 = vmov (!%p241_p2), 0.0   ;;  %v1933_v2 = vld [vmem:[%s2393_s1 + $0x8] sm:$0xff] (!%p241_p2)   ;;  %vm2009_vm0 = vmmov (!%p241_p2), 0   ;;  %p276_p3 = scmp.lt.s32.totalorder (!%p241_p2), %s1465_s25, 1  ;;  %vm291_vm1 = vcmask (!%p241_p2), 516096  }
   0x6   : > { %244 = sbr.rel (%p241_p2) target bundleno = 866 (0x362), region = 44  ;;  %1726 = vmatprep.subr.bf16.mxu0 (!%p241_p2), %v2008_v1  ;;  %569 = vst [vmem:[#allocation3] sm:$0x1] (!%p241_p2), %v2008_v1  ;;  %570 = vst [vmem:[#allocation3 + $0x11] sm:$0x1] (!%p241_p2), %v2008_v1  ;;  %1762 = vmatprep.subr.bf16.mxu1 (!%p241_p2), %v2008_v1  ;;  %vm296_vm2 = vcmask (!%p241_p2), 523264  }
   0x7   : > { %1727 = vmatpush3.bf16.msra.mxu0 (!%p241_p2), %v1932_v0  ;;  %1734 = vmatprep.mubr.msk.bf16.mxu0 (!%p241_p2), %vm2009_vm0, %v2008_v1  ;;  %292 = vst.msk [vmem:[#allocation2] sm:$0x1] (!%p241_p2), %vm291_vm1, %v2008_v1  ;;  %293 = vst.msk [vmem:[#allocation2 + $0x11] sm:$0x1] (!%p241_p2), %vm291_vm1, %v2008_v1  ;;  %v1934_v3 = vld [vmem:[%s2393_s1 + $0x10] sm:$0xff] (!%p241_p2)   ;;  %v1935_v6 = vld [vmem:[%s2393_s1 + $0x18] sm:$0xff] (!%p241_p2)  }
   0x8   : > { %1728 = vmatprep.subr.bf16.mxu0 (!%p241_p2), %v2008_v1  ;;  %1778 = vmatprep.mubr.msk.bf16.mxu1 (!%p241_p2), %vm2009_vm0, %v2008_v1  ;;  %934 = vst.msk [vmem:[#allocation5] sm:$0xff] (!%p241_p2), %vm296_vm2, %v2008_v1  ;;  %v1944_v7 = vld [vmem:[%s2395_s3] sm:$0xff] (!%p241_p2)   ;;  %v1945_v8 = vld [vmem:[%s2395_s3 + $0x8] sm:$0xff] (!%p241_p2)   ;;  %v1946_v14 = vld [vmem:[%s2395_s3 + $0x10] sm:$0xff] (!%p241_p2)  }
   0x9   : > { %1763 = vmatpush3.bf16.msra.mxu1 (!%p241_p2), %v1944_v7  ;;  %v1936_v11 = vld [vmem:[%s2393_s1 + $0x20] sm:$0xff] (!%p241_p2)   ;;  %v1937_v13 = vld [vmem:[%s2393_s1 + $0x28] sm:$0xff] (!%p241_p2)   ;;  %v1947_v15 = vld [vmem:[%s2395_s3 + $0x18] sm:$0xff] (!%p241_p2)  }
   0xa   : > { %1764 = vmatprep.subr.bf16.mxu1 (!%p241_p2), %v2008_v1  ;;  %v1938_v16 = vld [vmem:[%s2393_s1 + $0x30] sm:$0xff] (!%p241_p2)   ;;  %v1939_v17 = vld [vmem:[%s2393_s1 + $0x38] sm:$0xff] (!%p241_p2)   ;;  %v1940_v20 = vld [vmem:[%s2393_s1 + $0x40] sm:$0xff] (!%p241_p2)  }
   0xb   : > { %1729 = vmatpush3.bf16.msra.mxu0 (!%p241_p2), %v1933_v2  ;;  %v1941_v22 = vld [vmem:[%s2393_s1 + $0x48] sm:$0xff] (!%p241_p2)   ;;  %v1942_v23 = vld [vmem:[%s2393_s1 + $0x50] sm:$0xff] (!%p241_p2)   ;;  %v1943_v24 = vld [vmem:[%s2393_s1 + $0x58] sm:$0xff] (!%p241_p2)  }
   0xc   : > { %1730 = vmatprep.subr.bf16.mxu0 (!%p241_p2), %v2008_v1  ;;  %v1948_v28 = vld [vmem:[%s2395_s3 + $0x20] sm:$0xff] (!%p241_p2)   ;;  %v1949_v29 = vld [vmem:[%s2395_s3 + $0x28] sm:$0xff] (!%p241_p2)   ;;  %v1950_v30 = vld [vmem:[%s2395_s3 + $0x30] sm:$0xff] (!%p241_p2)  }
   0xd   : > { %s2401_s25 = smov (!%p276_p3, %s1465_s25), 1  ;;  %1765 = vmatpush3.bf16.msra.mxu1 %v1945_v8  ;;  %v1951_v31 = vld [vmem:[%s2395_s3 + $0x38] sm:$0xff]   ;;  %v1968_v32 = vld [vmem:[%s2397_s5] sm:$0xff]   ;;  %v1970_v33 = vld [vmem:[%s2397_s5 + $0x8] sm:$0xff]  }
   0xe   : > { %s1646_s9 = sshll.u32 %s2401_s25, 4  ;;  %1766 = vmatprep.subr.bf16.mxu1 %v2008_v1  ;;  %v1972_v34 = vld [vmem:[%s2397_s5 + $0x10] sm:$0xff]   ;;  %v1974_v35 = vld [vmem:[%s2397_s5 + $0x18] sm:$0xff]   ;;  %v1475_v36 = vld [vmem:[%s2394_s2] ss:$0 sm:$0xff]  ;;  %s1474_s30 = sshll.u32 %s2401_s25, 3 }
   0xf   : > { %s280_s12 = scalar_lea.vmem %s2392_s0, %s1646_s9  ;;  %1731 = vmatpush3.bf16.msra.mxu0 %v1934_v3  ;;  %v1952_v48 = vld [vmem:[%s2395_s3 + $0x40] sm:$0xff]   ;;  %v1953_v50 = vld [vmem:[%s2395_s3 + $0x48] sm:$0xff]   ;;  %v1954_v51 = vld [vmem:[%s2395_s3 + $0x50] sm:$0xff]   ;;  %s285_s17 = scalar_lea.vmem %s2398_s6, %s1646_s9 }
  0x10   : > { %v294_v4 = vld [vmem:[%s280_s12] sm:$0xff]  ;;  %v295_v5 = vld [vmem:[%s280_s12 + $0x8] sm:$0xff]  ;;  %1732 = vmatprep.subr.bf16.mxu0 %v2008_v1  ;;  %v1955_v52 = vld [vmem:[%s2395_s3 + $0x58] sm:$0xff]   ;;  %s289_s11 = scalar_lea.vmem %s2399_s7, %s1474_s30 }
  0x11   : > { %297 = vst.msk [vmem:[#allocation2 + $0x1] sm:$0xff] %vm296_vm2, %v294_v4  ;;  %298 = vst.msk [vmem:[#allocation2 + $0x9] sm:$0xff] %vm296_vm2, %v295_v5  ;;  %1767 = vmatpush3.bf16.msra.mxu1 %v1946_v14  ;;  %v1956_v53 = vld [vmem:[%s2395_s3 + $0x60] sm:$0xff]   ;;  %v1957_v54 = vld [vmem:[%s2395_s3 + $0x68] sm:$0xff]  }
  0x12   : > { %1768 = vmatprep.subr.bf16.mxu1 %v2008_v1  ;;  %v1958_v55 = vld [vmem:[%s2395_s3 + $0x70] sm:$0xff]   ;;  %v1959_v56 = vld [vmem:[%s2395_s3 + $0x78] sm:$0xff]   ;;  %v1960_v57 = vld [vmem:[%s2395_s3 + $0x80] sm:$0xff]  }
  0x13   : > { %1733 = vmatpush3.bf16.msra.mxu0 %v1935_v6  ;;  %v1961_v58 = vld [vmem:[%s2395_s3 + $0x88] sm:$0xff]   ;;  %v1962_v59 = vld [vmem:[%s2395_s3 + $0x90] sm:$0xff]   ;;  %v1963_v60 = vld [vmem:[%s2395_s3 + $0x98] sm:$0xff]  }
  0x14   : > { %1738 = vmatprep.subr.bf16.mxu0 %v2008_v1  ;;  %v1964_v61 = vld [vmem:[%s2395_s3 + $0xa0] sm:$0xff]   ;;  %v1965_v62 = vld [vmem:[%s2395_s3 + $0xa8] sm:$0xff]   ;;  %v1966_v63 = vld [vmem:[%s2395_s3 + $0xb0] sm:$0xff]  }
  0x15   : > { %1769 = vmatpush3.bf16.msra.mxu1 %v1947_v15  ;;  %v1967_v0 = vld [vmem:[%s2395_s3 + $0xb8] sm:$0xff]   ;;  %v1969_v4 = vld [vmem:[%s2397_s5 + $0x80] sm:$0xff]   ;;  %v1971_v6 = vld [vmem:[%s2397_s5 + $0x88] sm:$0xff]  }
  0x16   : > { %1770 = vmatprep.subr.bf16.mxu1 %v2008_v1  ;;  %v1973_v7 = vld [vmem:[%s2397_s5 + $0x90] sm:$0xff]   ;;  %v1975_v8 = vld [vmem:[%s2397_s5 + $0x98] sm:$0xff]  }
  0x17   : > { %v1981_v14 = vld [vmem:[%s2397_s5 + $0xb0] sm:$0xff]   ;;  %v1982_v15 = vld [vmem:[%s2397_s5 + $0x38] sm:$0xff]  }
  0x18   : > { %v310_v9 = vld [vmem:[#allocation2] sm:$0xff]  ;;  %v311_v10 = vld [vmem:[#allocation2 + $0x8] sm:$0xff] }
  0x19   : > { %v312_v12 = vpack.c.bf16 %v311_v10, %v310_v9  ;;  %v395_v18 = vld [vmem:[#allocation2 + $0x1] sm:$0xff]  ;;  %v396_v19 = vld [vmem:[#allocation2 + $0x9] sm:$0xff]  ;;  %1771 = vmatpush3.bf16.msra.mxu1 %v1948_v28 }
  0x1a   : > { %v397_v21 = vpack.c.bf16 %v396_v19, %v395_v18  ;;  %v481_v25 = vld [vmem:[#allocation2 + $0x2] sm:$0xff]  ;;  %v482_v26 = vld [vmem:[#allocation2 + $0xa] sm:$0xff]  ;;  %1772 = vmatprep.subr.bf16.mxu1 %v2008_v1 }
  0x1b   : > { %1735 = vmatmul.mubr.msk.bf16.vlgmr.msra.gmra.mrb[0].mxu0 %vm296_vm2, %v312_v12  ;;  %v483_v27 = vpack.c.bf16 %v482_v26, %v481_v25  ;;  %v1976_v9 = vld [vmem:[%s2397_s5 + $0x20] sm:$0xff]   ;;  %v1979_v12 = vld [vmem:[%s2397_s5 + $0xa8] sm:$0xff]  }
  0x1c   : > { %1739 = vmatpush3.bf16.msra.mxu0 %v1936_v11  ;;  %1746 = vmatprep.mubr.msk.bf16.mxu0 %vm2009_vm0, %v2008_v1  ;;  %v1977_v10 = vld [vmem:[%s2397_s5 + $0xa0] sm:$0xff]   ;;  %v1978_v11 = vld [vmem:[%s2397_s5 + $0x28] sm:$0xff]  }
  0x1d   : > { %1740 = vmatprep.subr.bf16.mxu0 %v2008_v1  ;;  %1773 = vmatpush3.bf16.msra.mxu1 %v1949_v29 }
  0x1e   : > { %1774 = vmatprep.subr.bf16.mxu1 %v2008_v1 }
  0x20   : > { %1741 = vmatpush3.bf16.msra.mxu0 %v1937_v13  ;;  %v1980_v13 = vld [vmem:[%s2397_s5 + $0x30] sm:$0xff]  }
  0x21   : > { %1742 = vmatprep.subr.bf16.mxu0 %v2008_v1  ;;  %1775 = vmatpush3.bf16.msra.mxu1 %v1950_v30 }
  0x22   : > { %1776 = vmatprep.subr.bf16.mxu1 %v2008_v1 }
  0x24   : > { %1743 = vmatpush3.bf16.msra.mxu0 %v1938_v16  ;;  %v1983_v16 = vld [vmem:[%s2397_s5 + $0xb8] sm:$0xff]  }
  0x25   : > { %1744 = vmatprep.subr.bf16.mxu0 %v2008_v1  ;;  %1777 = vmatpush3.bf16.msra.mxu1 %v1951_v31  ;;  %v1985_v31 = vld [vmem:[%s2397_s5 + $0x48] sm:$0xff]  }
  0x26   : > { %1782 = vmatprep.subr.bf16.mxu1 %v2008_v1 }
  0x28   : > { %1745 = vmatpush3.bf16.msra.mxu0 %v1939_v17  ;;  %v1507_v17 = vld [vmem:[%s2396_s4] ss:$0 sm:$0xff] }
  0x29   : > { %1750 = vmatprep.subr.bf16.mxu0 %v2008_v1 }
  0x2b   : > { %1747 = vmatmul.mubr.msk.bf16.vlgmr.msra.gmra.mrb[0].mxu0 %vm296_vm2, %v397_v21 }
  0x2c   : > { %1751 = vmatpush3.bf16.msra.mxu0 %v1940_v20  ;;  %1758 = vmatprep.mubr.msk.bf16.mxu0 %vm2009_vm0, %v2008_v1 }
  0x2d   : > { %1752 = vmatprep.subr.bf16.mxu0 %v2008_v1 }
  0x30   : > { %1753 = vmatpush3.bf16.msra.mxu0 %v1941_v22 }
  0x31   : > { %1754 = vmatprep.subr.bf16.mxu0 %v2008_v1 }
  0x34   : > { %1755 = vmatpush3.bf16.msra.mxu0 %v1942_v23 }
  0x35   : > { %1756 = vmatprep.subr.bf16.mxu0 %v2008_v1 }
  0x38   : > { %1757 = vmatpush3.bf16.msra.mxu0 %v1943_v24 }
  0x39   : > { %1822 = vmatprep.subr.bf16.mxu0 %v2008_v1 }
  0x3b   : > { %1759 = vmatmul.mubr.msk.bf16.vlgmr.msra.gmra.mrb[0].mxu0 %vm296_vm2, %v483_v27  ;;  %v1984_v27 = vld [vmem:[%s2397_s5 + $0x40] sm:$0xff]  }
  0x3c   : > { %1838 = vmatprep.mubr.msk.bf16.mxu0 %vm2009_vm0, %v2008_v1  ;;  %1823 = vmatpush3.bf16.msra.mxu0 %v1968_v32  ;;  %v1986_v32 = vld [vmem:[%s2397_s5 + $0x50] sm:$0xff]  }
  0x3d   : > { %1824 = vmatprep.subr.bf16.mxu0 %v2008_v1 }
  0x40   : > { %1825 = vmatpush3.bf16.msra.mxu0 %v1970_v33  ;;  %v1987_v33 = vld [vmem:[%s2397_s5 + $0x58] sm:$0xff]  }
  0x41   : > { %1826 = vmatprep.subr.bf16.mxu0 %v2008_v1 }
  0x44   : > { %1827 = vmatpush3.bf16.msra.mxu0 %v1972_v34  ;;  %v1988_v34 = vld [vmem:[%s2397_s5 + $0x60] sm:$0xff]  }
  0x45   : > { %1828 = vmatprep.subr.bf16.mxu0 %v2008_v1 }
  0x48   : > { %1829 = vmatpush3.bf16.msra.mxu0 %v1974_v35  ;;  %v1989_v35 = vld [vmem:[%s2397_s5 + $0x68] sm:$0xff]  }
  0x49   : > { %1830 = vmatprep.subr.bf16.mxu0 %v2008_v1 }
  0x4c   : > { %1831 = vmatpush3.bf16.msra.mxu0 %v1976_v9 }
  0x4d   : > { %1832 = vmatprep.subr.bf16.mxu0 %v2008_v1 }
  0x50   : > { %1833 = vmatpush3.bf16.msra.mxu0 %v1978_v11 }
  0x51   : > { %1834 = vmatprep.subr.bf16.mxu0 %v2008_v1 }
  0x54   : > { %1835 = vmatpush3.bf16.msra.mxu0 %v1980_v13 }
  0x55   : > { %1836 = vmatprep.subr.bf16.mxu0 %v2008_v1 }
  0x58   : > { %1837 = vmatpush3.bf16.msra.mxu0 %v1982_v15 }
  0x59   : > { %1842 = vmatprep.subr.bf16.mxu0 %v2008_v1 }
 0x10e   : > { %v554_v37 = vpop.f32.mrb[0].mxu0 }
 0x10f   : > { %v1902_v38 = vadd.f32 %v1475_v36, %v554_v37  ;;  %v1760_v39 = vpop.f32.mrb[1].mxu0  ;;  %v1991_v37 = vld [vmem:[%s2397_s5 + $0x78] sm:$0xff]  }
 0x110   : > { %v557_v40 = vpop.f32.mrb[2].mxu0  ;;  %v1992_v39 = vld [vmem:[%s2397_s5 + $0xc0] sm:$0xff]  }
 0x111   : > { %v567_v41 = vmax.f32 %v1902_v38, 0.0  ;;  %v1903_v42 = vadd.f32 %v1475_v36, %v557_v40  ;;  %v1761_v43 = vpop.f32.mrb[3].mxu0  ;;  %v1990_v36 = vld [vmem:[%s2397_s5 + $0x70] sm:$0xff]  }
 0x112   : > { %v1995_v43 = vld [vmem:[%s2397_s5 + $0xd8] sm:$0xff]  }
 0x113   : > { %571 = vst [vmem:[#allocation3 + $0x1] sm:$0xff] %v567_v41  ;;  %v568_v44 = vmax.f32 %v1903_v42, 0.0  ;;  %v1994_v42 = vld [vmem:[%s2397_s5 + $0xd0] sm:$0xff]  }
 0x115   : > { %572 = vst [vmem:[#allocation3 + $0x9] sm:$0xff] %v568_v44  ;;  %v700_v45 = vpack.c.bf16 %v568_v44, %v567_v41  ;;  %v1993_v41 = vld [vmem:[%s2397_s5 + $0xc8] sm:$0xff]   ;;  %v1996_v44 = vld [vmem:[%s2397_s5 + $0xe0] sm:$0xff]  }
 0x11a   : > { %v584_v46 = vld [vmem:[#allocation3] sm:$0xff] }
 0x11c   : > { %v585_v47 = vld [vmem:[#allocation3 + $0x8] sm:$0xff] }
 0x11d   : > { %v586_v49 = vpack.c.bf16 %v585_v47, %v584_v46  ;;  %v813_v2 = vld [vmem:[#allocation3 + $0x2] sm:$0xff]  ;;  %v814_v3 = vld [vmem:[#allocation3 + $0xa] sm:$0xff]  ;;  %v1998_v46 = vld [vmem:[%s2397_s5 + $0xf0] sm:$0xff]  }
 0x11e   : > { %v815_v5 = vpack.c.bf16 %v814_v3, %v813_v2  ;;  %v1999_v47 = vld [vmem:[%s2397_s5 + $0xf8] sm:$0xff]  }
 0x11f   : > { %1779 = vmatmul.mubr.bf16.vlgmr.msra.gmra.mrb[0].mxu1 %v586_v49 }
 0x120   : > { %1783 = vmatpush3.bf16.msra.mxu1 %v1952_v48  ;;  %1798 = vmatprep.mubr.msk.bf16.mxu1 %vm2009_vm0, %v2008_v1 }
 0x121   : > { %1784 = vmatprep.subr.bf16.mxu1 %v2008_v1 }
 0x124   : > { %1785 = vmatpush3.bf16.msra.mxu1 %v1953_v50  ;;  %v937_v50 = vld [vmem:[#allocation5] sm:$0xff] }
 0x125   : > { %1786 = vmatprep.subr.bf16.mxu1 %v2008_v1 }
 0x128   : > { %1787 = vmatpush3.bf16.msra.mxu1 %v1954_v51 }
 0x129   : > { %1788 = vmatprep.subr.bf16.mxu1 %v2008_v1 }
 0x12c   : > { %1789 = vmatpush3.bf16.msra.mxu1 %v1955_v52 }
 0x12d   : > { %1790 = vmatprep.subr.bf16.mxu1 %v2008_v1 }
 0x130   : > { %1791 = vmatpush3.bf16.msra.mxu1 %v1956_v53 }
 0x131   : > { %1792 = vmatprep.subr.bf16.mxu1 %v2008_v1 }
 0x134   : > { %1793 = vmatpush3.bf16.msra.mxu1 %v1957_v54 }
 0x135   : > { %1794 = vmatprep.subr.bf16.mxu1 %v2008_v1 }
 0x138   : > { %1795 = vmatpush3.bf16.msra.mxu1 %v1958_v55 }
 0x139   : > { %1796 = vmatprep.subr.bf16.mxu1 %v2008_v1 }
 0x13c   : > { %1797 = vmatpush3.bf16.msra.mxu1 %v1959_v56 }
 0x13d   : > { %1802 = vmatprep.subr.bf16.mxu1 %v2008_v1 }
 0x13f   : > { %1799 = vmatmul.mubr.bf16.vlgmr.msra.gmra.mrb[0].mxu1 %v700_v45  ;;  %v1997_v45 = vld [vmem:[%s2397_s5 + $0xe8] sm:$0xff]  }
 0x140   : > { %1803 = vmatpush3.bf16.msra.mxu1 %v1960_v57  ;;  %1818 = vmatprep.mubr.msk.bf16.mxu1 %vm2009_vm0, %v2008_v1 }
 0x141   : > { %1804 = vmatprep.subr.bf16.mxu1 %v2008_v1 }
 0x144   : > { %1805 = vmatpush3.bf16.msra.mxu1 %v1961_v58 }
 0x145   : > { %1806 = vmatprep.subr.bf16.mxu1 %v2008_v1 }
 0x148   : > { %1807 = vmatpush3.bf16.msra.mxu1 %v1962_v59 }
 0x149   : > { %1808 = vmatprep.subr.bf16.mxu1 %v2008_v1 }
 0x14c   : > { %1809 = vmatpush3.bf16.msra.mxu1 %v1963_v60 }
 0x14d   : > { %1810 = vmatprep.subr.bf16.mxu1 %v2008_v1 }
 0x150   : > { %1811 = vmatpush3.bf16.msra.mxu1 %v1964_v61 }
 0x151   : > { %1812 = vmatprep.subr.bf16.mxu1 %v2008_v1 }
 0x154   : > { %1813 = vmatpush3.bf16.msra.mxu1 %v1965_v62 }
 0x155   : > { %1814 = vmatprep.subr.bf16.mxu1 %v2008_v1 }
 0x158   : > { %1815 = vmatpush3.bf16.msra.mxu1 %v1966_v63 }
 0x159   : > { %1816 = vmatprep.subr.bf16.mxu1 %v2008_v1 }
 0x15c   : > { %1817 = vmatpush3.bf16.msra.mxu1 %v1967_v0 }
 0x15d   : > { %1862 = vmatprep.subr.bf16.mxu1 %v2008_v1 }
 0x15f   : > { %1819 = vmatmul.mubr.bf16.vlgmr.msra.gmra.mrb[0].mxu1 %v815_v5 }
 0x160   : > { %1863 = vmatpush3.bf16.msra.mxu1 %v1969_v4  ;;  %1878 = vmatprep.mubr.msk.bf16.mxu1 %vm2009_vm0, %v2008_v1 }
 0x161   : > { %1864 = vmatprep.subr.bf16.mxu1 %v2008_v1 }
 0x164   : > { %1865 = vmatpush3.bf16.msra.mxu1 %v1971_v6 }
 0x165   : > { %1866 = vmatprep.subr.bf16.mxu1 %v2008_v1 }
 0x168   : > { %1867 = vmatpush3.bf16.msra.mxu1 %v1973_v7 }
 0x169   : > { %1868 = vmatprep.subr.bf16.mxu1 %v2008_v1 }
 0x16c   : > { %1869 = vmatpush3.bf16.msra.mxu1 %v1975_v8 }
 0x16d   : > { %1870 = vmatprep.subr.bf16.mxu1 %v2008_v1 }
 0x170   : > { %1871 = vmatpush3.bf16.msra.mxu1 %v1977_v10 }
 0x171   : > { %1872 = vmatprep.subr.bf16.mxu1 %v2008_v1 }
 0x174   : > { %1873 = vmatpush3.bf16.msra.mxu1 %v1979_v12 }
 0x175   : > { %1874 = vmatprep.subr.bf16.mxu1 %v2008_v1 }
 0x178   : > { %1875 = vmatpush3.bf16.msra.mxu1 %v1981_v14 }
 0x179   : > { %1876 = vmatprep.subr.bf16.mxu1 %v2008_v1 }
 0x17c   : > { %1877 = vmatpush3.bf16.msra.mxu1 %v1983_v16 }
 0x232   : > { %v915_v18 = vpop.f32.mrb[0].mxu1 }
 0x233   : > { %v1904_v19 = vadd.f32 %v1507_v17, %v915_v18  ;;  %v1820_v20 = vpop.f32.mrb[1].mxu1 }
 0x234   : > { %v918_v21 = vpop.f32.mrb[2].mxu1 }
 0x235   : > { %v928_v22 = vmax.f32 %v1904_v19, 0.0  ;;  %v1905_v23 = vadd.f32 %v1507_v17, %v918_v21  ;;  %v1821_v24 = vpop.f32.mrb[3].mxu1 }
 0x237   : > { %930 = vst [vmem:[%s285_s17] sm:$0xff] %v928_v22  ;;  %932 = vst [vmem:[#allocation3 + $0x1] sm:$0xff] %v928_v22  ;;  %v929_v25 = vmax.f32 %v1905_v23, 0.0 }
 0x239   : > { %931 = vst [vmem:[%s285_s17 + $0x8] sm:$0xff] %v929_v25  ;;  %933 = vst [vmem:[#allocation3 + $0x9] sm:$0xff] %v929_v25 }
 0x240   : > { %v935_v26 = vld [vmem:[#allocation3] ss:$2 sm:$0xff]  ;;  %v1045_v38 = vld [vmem:[#allocation3 + $0x1] ss:$2 sm:$0xff] }
 0x241   : > { %v1156_v28 = vld [vmem:[#allocation3 + $0x2] ss:$2 sm:$0xff]  ;;  %v936_v29 = vpack.c.bf16 %v935_v26, %v935_v26  ;;  %v1046_v40 = vpack.c.bf16 %v1045_v38, %v1045_v38  ;;  %v1267_v48 = vld [vmem:[#allocation3 + $0x3] ss:$2 sm:$0xff] }
 0x242   : > { %v1157_v30 = vpack.c.bf16 %v1156_v28, %v1156_v28  ;;  %v1268_v49 = vpack.c.bf16 %v1267_v48, %v1267_v48 }
 0x243   : > { %1839 = vmatmul.mubr.bf16.vlgmr.msra.gmra.mrb[4].mxu0 %v936_v29 }
 0x244   : > { %1879 = vmatmul.mubr.bf16.vlgmr.msra.gmra.mrb[4].mxu1 %v1157_v30  ;;  %1843 = vmatpush3.bf16.msra.mxu0 %v1984_v27 }
 0x245   : > { %1858 = vmatprep.mubr.msk.bf16.mxu0 %vm2009_vm0, %v2008_v1  ;;  %1844 = vmatprep.subr.bf16.mxu0 %v2008_v1 }
 0x248   : > { %1845 = vmatpush3.bf16.msra.mxu0 %v1985_v31 }
 0x249   : > { %1846 = vmatprep.subr.bf16.mxu0 %v2008_v1 }
 0x24c   : > { %1847 = vmatpush3.bf16.msra.mxu0 %v1986_v32 }
 0x24d   : > { %1848 = vmatprep.subr.bf16.mxu0 %v2008_v1 }
 0x250   : > { %1849 = vmatpush3.bf16.msra.mxu0 %v1987_v33 }
 0x251   : > { %1850 = vmatprep.subr.bf16.mxu0 %v2008_v1 }
 0x254   : > { %1851 = vmatpush3.bf16.msra.mxu0 %v1988_v34 }
 0x255   : > { %1852 = vmatprep.subr.bf16.mxu0 %v2008_v1 }
 0x258   : > { %1853 = vmatpush3.bf16.msra.mxu0 %v1989_v35 }
 0x259   : > { %1854 = vmatprep.subr.bf16.mxu0 %v2008_v1 }
 0x25c   : > { %1855 = vmatpush3.bf16.msra.mxu0 %v1990_v36 }
 0x25d   : > { %1856 = vmatprep.subr.bf16.mxu0 %v2008_v1 }
 0x260   : > { %1857 = vmatpush3.bf16.msra.mxu0 %v1991_v37 }
 0x261   : > { %1882 = vmatprep.subr.bf16.mxu0 %v2008_v1 }
 0x263   : > { %1859 = vmatmul.mubr.bf16.vlgmr.msra.gmra.mrb[8].mxu0 %v1046_v40 }
 0x264   : > { %1883 = vmatpush3.bf16.msra.mxu0 %v1992_v39  ;;  %1898 = vmatprep.mubr.msk.bf16.mxu0 %vm2009_vm0, %v2008_v1 }
 0x265   : > { %1884 = vmatprep.subr.bf16.mxu0 %v2008_v1 }
 0x268   : > { %1885 = vmatpush3.bf16.msra.mxu0 %v1993_v41 }
 0x269   : > { %1886 = vmatprep.subr.bf16.mxu0 %v2008_v1 }
 0x26c   : > { %1887 = vmatpush3.bf16.msra.mxu0 %v1994_v42 }
 0x26d   : > { %1888 = vmatprep.subr.bf16.mxu0 %v2008_v1 }
 0x270   : > { %1889 = vmatpush3.bf16.msra.mxu0 %v1995_v43 }
 0x271   : > { %1890 = vmatprep.subr.bf16.mxu0 %v2008_v1 }
 0x274   : > { %1891 = vmatpush3.bf16.msra.mxu0 %v1996_v44 }
 0x275   : > { %1892 = vmatprep.subr.bf16.mxu0 %v2008_v1 }
 0x278   : > { %1893 = vmatpush3.bf16.msra.mxu0 %v1997_v45 }
 0x279   : > { %1894 = vmatprep.subr.bf16.mxu0 %v2008_v1 }
 0x27c   : > { %1895 = vmatpush3.bf16.msra.mxu0 %v1998_v46 }
 0x27d   : > { %1896 = vmatprep.subr.bf16.mxu0 %v2008_v1 }
 0x280   : > { %1897 = vmatpush3.bf16.msra.mxu0 %v1999_v47 }
 0x283   : > { %1899 = vmatmul.mubr.bf16.vlgmr.msra.gmra.mrb[12].mxu0 %v1268_v49 }
 0x316   : > { %v1036_v51 = vpop.f32.mrb[4].mxu0 }
 0x317   : > { %v1258_v52 = vpop.f32.mrb[4].mxu1  ;;  %v1042_v53 = vadd.f32 %v1036_v51, %v937_v50  ;;  %v1840_v54 = vpop.f32.mrb[5].mxu0 }
 0x318   : > { %v1880_v55 = vpop.f32.mrb[5].mxu1  ;;  %v1039_v56 = vpop.f32.mrb[6].mxu0 }
 0x319   : > { %v1261_v57 = vpop.f32.mrb[6].mxu1  ;;  %1043 = vst.msk [vmem:[#allocation5] sm:$0xff] %vm296_vm2, %v1042_v53  ;;  %v1841_v58 = vpop.f32.mrb[7].mxu0 }
 0x31a   : > { %v1881_v59 = vpop.f32.mrb[7].mxu1 }
 0x320   : > { %v1047_v60 = vld [vmem:[#allocation5] sm:$0xff] }
 0x336   : > { %v1147_v61 = vpop.f32.mrb[8].mxu0 }
 0x337   : > { %v1153_v1 = vadd.f32 %v1147_v61, %v1047_v60  ;;  %v1860_v62 = vpop.f32.mrb[9].mxu0 }
 0x338   : > { %v1150_v63 = vpop.f32.mrb[10].mxu0 }
 0x339   : > { %1154 = vst.msk [vmem:[#allocation5] sm:$0xff] %vm296_vm2, %v1153_v1  ;;  %v1861_v0 = vpop.f32.mrb[11].mxu0 }
 0x340   : > { %v1158_v2 = vld [vmem:[#allocation5] sm:$0xff] }
 0x341   : > { %v1264_v3 = vadd.f32 %v1258_v52, %v1158_v2 }
 0x343   : > { %1265 = vst.msk [vmem:[#allocation5] sm:$0xff] %vm296_vm2, %v1264_v3 }
 0x34a   : > { %v1269_v4 = vld [vmem:[#allocation5] sm:$0xff] }
 0x356   : > { %v1369_v5 = vpop.f32.mrb[12].mxu0 }
 0x357   : > { %v1375_v6 = vadd.f32 %v1369_v5, %v1269_v4  ;;  %v1900_v7 = vpop.f32.mrb[13].mxu0 }
 0x358   : > { %v1372_v8 = vpop.f32.mrb[14].mxu0 }
 0x359   : > { %1376 = vst.msk [vmem:[#allocation5] sm:$0xff] %vm296_vm2, %v1375_v6  ;;  %v1901_v9 = vpop.f32.mrb[15].mxu0 }
 0x360   : > { %v1377_v10 = vld [vmem:[#allocation5] sm:$0xff] }
 0x361   : > { %1378 = vst.msk [vmem:[%s289_s11] sm:$0xff] %vm296_vm2, %v1377_v10 }
 0x362 PF: > { %s18_s24 = sadd.s32 1, %s2006_s24  }
 0x363   : > { %p15_p4 = scmp.ge.s32.totalorder %s18_s24, 4  }
 0x365   :  { %17 = sbr.rel (!%p15_p4) target bundleno = 1 (0x1), region = 96 }

</bundles_post_ra>
